<compile_context>
chip_gen: v6e
topology: v6e:2x2x1
jax: 0.10.0
libtpu: 0.0.40
codegen_flags: <defaults>
</compile_context>

<pallas_src>
import jax
import jax.numpy as jnp
from jax.experimental import pallas as pl
from jax.experimental.pallas import tpu as pltpu

OBS_SIZE = 4
HIDDEN = 64
NUM_ACTIONS = 4
OUT_PAD = 8  # pad the 4 action logits to 8 sublanes for clean stores

# Packed weight blob layout (bf16), shape (2*HIDDEN + OUT_PAD, HIDDEN) = (136, 64):
#   rows [0:64),   cols [0:4)  -> fc1.weight  (64, 4)   (out, in)
#   rows [64:128), cols [0:64) -> fc2.weight  (64, 64)
#   rows [128:132),cols [0:64) -> out.weight  (4, 64)   (rows 132:136 zero)
# Packed bias blob (f32), shape (HIDDEN, 3) = (64, 3):
#   col 0 -> fc1.bias (64,), col 1 -> fc2.bias (64,), col 2 rows [0:4) -> out.bias


def qnet_kernel(x_ref, w_ref, b_ref, o_ref):
    # x_ref: (OBS_SIZE, TB) bf16      -- batch tile on lanes
    # w_ref: (136, HIDDEN) bf16       -- packed weights
    # b_ref: (HIDDEN, 3) f32          -- packed biases
    # o_ref: (OUT_PAD, TB) f32
    tb = x_ref.shape[1]
    x = x_ref[...].astype(jnp.float32)                     # (4, TB)

    b1 = b_ref[:, 0:1]                                     # (64, 1)
    b2 = b_ref[:, 1:2]                                     # (64, 1)
    b3 = b_ref[0:OUT_PAD, 2:3]                             # (8, 1), rows 4:8 zero

    # ---- fc1: K=4 contraction as 4 broadcast FMAs on the VPU (f32) ----
    acc = jnp.broadcast_to(b1, (HIDDEN, tb))
    for k in range(OBS_SIZE):
        w1k = w_ref[0:HIDDEN, k:k + 1].astype(jnp.float32)  # (64, 1)
        acc = acc + w1k * x[k:k + 1, :]                      # (64, TB)
    h1 = jnp.tanh(acc)

    # ---- fc2: bf16 MXU matmul, f32 accumulation, f32 bias + tanh ----
    w2 = w_ref[HIDDEN:2 * HIDDEN, :]                         # (64, 64) bf16
    h2 = jnp.dot(w2, h1.astype(jnp.bfloat16),
                 preferred_element_type=jnp.float32)         # (64, TB) f32
    h2 = jnp.tanh(h2 + b2)

    # ---- out: bf16 MXU matmul into padded (8, TB) lane-dense output ----
    w3 = w_ref[2 * HIDDEN:2 * HIDDEN + OUT_PAD, :]           # (8, 64) bf16 (rows 4:8 zero)
    out = jnp.dot(w3, h2.astype(jnp.bfloat16),
                  preferred_element_type=jnp.float32)        # (8, TB) f32
    o_ref[...] = out + b3


def qnet_forward(x, packed_params, block_b=512):
    """x: (B, OBS_SIZE) f32 batch-major (torch layout). Returns (B, NUM_ACTIONS) f32."""
    w_blob, b_blob = packed_params
    B = x.shape[0]

    # Batch tile: multiple of 128 lanes; pad B up to a multiple of the tile.
    b_pad128 = ((B + 127) // 128) * 128
    tb = min(block_b, b_pad128)
    b_pad = ((B + tb - 1) // tb) * tb
    num_tiles = b_pad // tb

    # Feature-major bf16 input: (OBS_SIZE, B_pad), zero-padded tail columns.
    x_fm = jnp.pad(x.T.astype(jnp.bfloat16), ((0, 0), (0, b_pad - B)))

    flops = 2 * b_pad * (OBS_SIZE * HIDDEN + HIDDEN * HIDDEN + HIDDEN * OUT_PAD)
    bytes_accessed = (OBS_SIZE * b_pad * 2 + int(w_blob.size) * 2
                      + int(b_blob.size) * 4 + OUT_PAD * b_pad * 4)

    out_pad = pl.pallas_call(
        qnet_kernel,
        out_shape=jax.ShapeDtypeStruct((OUT_PAD, b_pad), jnp.float32),
        grid=(num_tiles,),
        in_specs=[
            pl.BlockSpec((OBS_SIZE, tb), lambda i: (0, i)),   # x: tile over batch lanes
            pl.BlockSpec(w_blob.shape, lambda i: (0, 0)),     # weights: resident
            pl.BlockSpec(b_blob.shape, lambda i: (0, 0)),     # biases: resident
        ],
        out_specs=pl.BlockSpec((OUT_PAD, tb), lambda i: (0, i)),
        compiler_params=pltpu.CompilerParams(
            dimension_semantics=("parallel",),          # megacore sharding on v7x
            vmem_limit_bytes=32 * 1024 * 1024,          # fits v7x's smaller VMEM
        ),
        cost_estimate=pl.CostEstimate(
            flops=flops,
            transcendentals=2 * b_pad * HIDDEN,
            bytes_accessed=bytes_accessed,
        ),
    )(x_fm, w_blob, b_blob)

    # Slice off the padded action rows / batch columns; back to batch-major.
    return out_pad[:NUM_ACTIONS, :B].T


def init_params_raw(key):
    """Torch-style nn.Linear default init: U(-1/sqrt(fan_in), 1/sqrt(fan_in)).
    Weights kept in torch layout (out_features, in_features)."""
    def linear(key, fan_in, fan_out):
        kw, kb = jax.random.split(key)
        bound = 1.0 / (fan_in ** 0.5)
        w = jax.random.uniform(kw, (fan_out, fan_in), jnp.float32, -bound, bound)
        b = jax.random.uniform(kb, (fan_out,), jnp.float32, -bound, bound)
        return w, b

    k1, k2, k3 = jax.random.split(key, 3)
    w1, b1 = linear(k1, OBS_SIZE, HIDDEN)
    w2, b2 = linear(k2, HIDDEN, HIDDEN)
    w3, b3 = linear(k3, HIDDEN, NUM_ACTIONS)
    return (w1, b1, w2, b2, w3, b3)


def pack_params(w1, b1, w2, b2, w3, b3):
    """Pack the six tensors into one bf16 weight blob + one f32 bias blob."""
    w_blob = jnp.zeros((2 * HIDDEN + OUT_PAD, HIDDEN), jnp.bfloat16)
    w_blob = w_blob.at[0:HIDDEN, 0:OBS_SIZE].set(w1.astype(jnp.bfloat16))
    w_blob = w_blob.at[HIDDEN:2 * HIDDEN, :].set(w2.astype(jnp.bfloat16))
    w_blob = w_blob.at[2 * HIDDEN:2 * HIDDEN + NUM_ACTIONS, :].set(
        w3.astype(jnp.bfloat16))

    b_blob = jnp.zeros((HIDDEN, 3), jnp.float32)
    b_blob = b_blob.at[:, 0].set(b1)
    b_blob = b_blob.at[:, 1].set(b2)
    b_blob = b_blob.at[0:NUM_ACTIONS, 2].set(b3)
    return (w_blob, b_blob)


def qnet_ref(x, raw_params):
    """Pure-JAX f32 reference (torch semantics)."""
    w1, b1, w2, b2, w3, b3 = raw_params
    h1 = jnp.tanh(x @ w1.T + b1)
    h2 = jnp.tanh(h1 @ w2.T + b2)
    return h2 @ w3.T + b3


if __name__ == "__main__":
    key = jax.random.PRNGKey(0)
    kp, kx = jax.random.split(key)

    raw_params = init_params_raw(kp)
    packed = pack_params(*raw_params)

    # Ragged batch (not a multiple of 128) to exercise padding; small tile
    # (128) so the demo actually runs >1 grid step of the pipeline.
    B = 200
    x = jax.random.normal(kx, (B, OBS_SIZE), dtype=jnp.float32)

    out = qnet_forward(x, packed, block_b=128)
    out = jax.block_until_ready(out)

    ref = qnet_ref(x, raw_params)
    assert out.shape == (B, NUM_ACTIONS)
    # Weights/activations are bf16 on the MXU -> loosened tolerance vs f32 ref.
    assert jnp.allclose(out, ref, atol=5e-2, rtol=5e-2)

    print("KERNEL_OK")
</pallas_src>

<mosaic_0001>
module attributes {stable_mosaic.version = 11 : i64} {
  func.func @qnet_kernel(%arg0: i32, %arg1: memref<4x128xbf16, #tpu.memory_space<vmem>>, %arg2: memref<136x64xbf16, #tpu.memory_space<vmem>>, %arg3: memref<64x3xf32, #tpu.memory_space<vmem>>, %arg4: memref<8x128xf32, #tpu.memory_space<vmem>>) attributes {dimension_semantics = [#tpu.dimension_semantics<parallel>], iteration_bounds = array<i64: 2>, scalar_prefetch = 0 : i64, scratch_operands = 0 : i64, tpu.core_type = #tpu.core_type<tc>, window_params = [{transform_indices = @transform_0, window_bounds = array<i64: 4, 128>}, {pipeline_mode = #tpu.pipeline_mode<synchronous>, transform_indices = @transform_1, window_bounds = array<i64: 136, 64>}, {pipeline_mode = #tpu.pipeline_mode<synchronous>, transform_indices = @transform_2, window_bounds = array<i64: 64, 3>}, {transform_indices = @transform_3, window_bounds = array<i64: 8, 128>}]} {
    %c0 = arith.constant 0 : index
    %c0_0 = arith.constant 0 : index
    %0 = vector.load %arg1[%c0, %c0_0] : memref<4x128xbf16, #tpu.memory_space<vmem>>, vector<4x128xbf16>
    %1 = arith.extf %0 : vector<4x128xbf16> to vector<4x128xf32>
    %c0_1 = arith.constant 0 : index
    %c0_2 = arith.constant 0 : index
    %2 = vector.load %arg3[%c0_1, %c0_2] : memref<64x3xf32, #tpu.memory_space<vmem>>, vector<64x1xf32>
    %c0_3 = arith.constant 0 : index
    %c1 = arith.constant 1 : index
    %3 = vector.load %arg3[%c0_3, %c1] : memref<64x3xf32, #tpu.memory_space<vmem>>, vector<64x1xf32>
    %c0_4 = arith.constant 0 : index
    %c2 = arith.constant 2 : index
    %4 = vector.load %arg3[%c0_4, %c2] : memref<64x3xf32, #tpu.memory_space<vmem>>, vector<8x1xf32>
    %5 = vector.shape_cast %2 : vector<64x1xf32> to vector<64x1xf32>
    %6 = vector.broadcast %5 : vector<64x1xf32> to vector<64x128xf32>
    %c0_5 = arith.constant 0 : index
    %c0_6 = arith.constant 0 : index
    %7 = vector.load %arg2[%c0_5, %c0_6] : memref<136x64xbf16, #tpu.memory_space<vmem>>, vector<64x1xbf16>
    %8 = arith.extf %7 : vector<64x1xbf16> to vector<64x1xf32>
    %9 = vector.extract_strided_slice %1 {offsets = [0, 0], sizes = [1, 128], strides = [1, 1]} : vector<4x128xf32> to vector<1x128xf32>
    %10 = vector.broadcast %8 : vector<64x1xf32> to vector<64x128xf32>
    %11 = vector.broadcast %9 : vector<1x128xf32> to vector<64x128xf32>
    %12 = arith.mulf %10, %11 : vector<64x128xf32>
    %13 = arith.addf %6, %12 : vector<64x128xf32>
    %c0_7 = arith.constant 0 : index
    %c1_8 = arith.constant 1 : index
    %14 = vector.load %arg2[%c0_7, %c1_8] : memref<136x64xbf16, #tpu.memory_space<vmem>>, vector<64x1xbf16>
    %15 = arith.extf %14 : vector<64x1xbf16> to vector<64x1xf32>
    %16 = vector.extract_strided_slice %1 {offsets = [1, 0], sizes = [1, 128], strides = [1, 1]} : vector<4x128xf32> to vector<1x128xf32>
    %17 = vector.broadcast %15 : vector<64x1xf32> to vector<64x128xf32>
    %18 = vector.broadcast %16 : vector<1x128xf32> to vector<64x128xf32>
    %19 = arith.mulf %17, %18 : vector<64x128xf32>
    %20 = arith.addf %13, %19 : vector<64x128xf32>
    %c0_9 = arith.constant 0 : index
    %c2_10 = arith.constant 2 : index
    %21 = vector.load %arg2[%c0_9, %c2_10] : memref<136x64xbf16, #tpu.memory_space<vmem>>, vector<64x1xbf16>
    %22 = arith.extf %21 : vector<64x1xbf16> to vector<64x1xf32>
    %23 = vector.extract_strided_slice %1 {offsets = [2, 0], sizes = [1, 128], strides = [1, 1]} : vector<4x128xf32> to vector<1x128xf32>
    %24 = vector.broadcast %22 : vector<64x1xf32> to vector<64x128xf32>
    %25 = vector.broadcast %23 : vector<1x128xf32> to vector<64x128xf32>
    %26 = arith.mulf %24, %25 : vector<64x128xf32>
    %27 = arith.addf %20, %26 : vector<64x128xf32>
    %c0_11 = arith.constant 0 : index
    %c3 = arith.constant 3 : index
    %28 = vector.load %arg2[%c0_11, %c3] : memref<136x64xbf16, #tpu.memory_space<vmem>>, vector<64x1xbf16>
    %29 = arith.extf %28 : vector<64x1xbf16> to vector<64x1xf32>
    %30 = vector.extract_strided_slice %1 {offsets = [3, 0], sizes = [1, 128], strides = [1, 1]} : vector<4x128xf32> to vector<1x128xf32>
    %31 = vector.broadcast %29 : vector<64x1xf32> to vector<64x128xf32>
    %32 = vector.broadcast %30 : vector<1x128xf32> to vector<64x128xf32>
    %33 = arith.mulf %31, %32 : vector<64x128xf32>
    %34 = arith.addf %27, %33 : vector<64x128xf32>
    %35 = math.tanh %34 : vector<64x128xf32>
    %c64 = arith.constant 64 : index
    %c0_12 = arith.constant 0 : index
    %36 = vector.load %arg2[%c64, %c0_12] : memref<136x64xbf16, #tpu.memory_space<vmem>>, vector<64x64xbf16>
    %37 = arith.truncf %35 : vector<64x128xf32> to vector<64x128xbf16>
    %cst = arith.constant dense<0.000000e+00> : vector<64x128xf32>
    %38 = tpu.matmul %36, %37, %cst {dimension_numbers = #tpu.dot_dimension_numbers<[1], [0], [0], [1], [0, 0, 1, 1], [], []>} : vector<64x64xbf16>, vector<64x128xbf16>, vector<64x128xf32> -> vector<64x128xf32>
    %39 = vector.broadcast %3 : vector<64x1xf32> to vector<64x128xf32>
    %40 = arith.addf %38, %39 : vector<64x128xf32>
    %41 = math.tanh %40 : vector<64x128xf32>
    %c128 = arith.constant 128 : index
    %c0_13 = arith.constant 0 : index
    %42 = vector.load %arg2[%c128, %c0_13] : memref<136x64xbf16, #tpu.memory_space<vmem>>, vector<8x64xbf16>
    %43 = arith.truncf %41 : vector<64x128xf32> to vector<64x128xbf16>
    %cst_14 = arith.constant dense<0.000000e+00> : vector<8x128xf32>
    %44 = tpu.matmul %42, %43, %cst_14 {dimension_numbers = #tpu.dot_dimension_numbers<[1], [0], [0], [1], [0, 0, 1, 1], [], []>} : vector<8x64xbf16>, vector<64x128xbf16>, vector<8x128xf32> -> vector<8x128xf32>
    %45 = vector.broadcast %4 : vector<8x1xf32> to vector<8x128xf32>
    %46 = arith.addf %44, %45 : vector<8x128xf32>
    %c0_15 = arith.constant 0 : index
    %c0_16 = arith.constant 0 : index
    %47 = vector.load %arg4[%c0_15, %c0_16] : memref<8x128xf32, #tpu.memory_space<vmem>>, vector<8x128xf32>
    tpu.vector_store %arg4[%c0_15, %c0_16], %46 {strides = array<i32>} : memref<8x128xf32, #tpu.memory_space<vmem>>, vector<8x128xf32>,
    return
  }
  func.func @transform_0(%arg0: i32) -> (i32, i32) {
    %c0_i32 = arith.constant 0 : i32
    %c0_i32_0 = arith.constant 0 : i32
    return %c0_i32, %arg0 : i32, i32
  }
  func.func @transform_1(%arg0: i32) -> (i32, i32) {
    %c0_i32 = arith.constant 0 : i32
    %c0_i32_0 = arith.constant 0 : i32
    %c0_i32_1 = arith.constant 0 : i32
    return %c0_i32, %c0_i32_0 : i32, i32
  }
  func.func @transform_2(%arg0: i32) -> (i32, i32) {
    %c0_i32 = arith.constant 0 : i32
    %c0_i32_0 = arith.constant 0 : i32
    %c0_i32_1 = arith.constant 0 : i32
    return %c0_i32, %c0_i32_0 : i32, i32
  }
  func.func @transform_3(%arg0: i32) -> (i32, i32) {
    %c0_i32 = arith.constant 0 : i32
    %c0_i32_0 = arith.constant 0 : i32
    return %c0_i32, %arg0 : i32, i32
  }
}

</mosaic_0001>

<bundles_post_ra>
// kernel: tpu_custom_call.1
= control target key start
LH: loop header
LB: loop body
LE: loop exit
PB: predicated region body
PF: predicated region fallthrough
CT: control target
= control target key end

     0   :  { %8 = vsyncpa [#allocation3], 0  ;;  %s1279_s0 = inlined_call_operand.vmem [shape: bf16[4,256], index: 0, kind: input, shape index: {}]   ;;  %s1280_s1 = inlined_call_operand.vmem [shape: bf16[136,64], index: 1, kind: input, shape index: {}]   ;;  %s1281_s2 = inlined_call_operand.vmem [shape: f32[64,3], index: 2, kind: input, shape index: {}]   ;;  %s1282_s3 = inlined_call_operand.hbm [shape: f32[8,256], index: 3, kind: output, shape index: {}]  }
   0x1   :  { %10 = vsyncpa [#allocation3 + $0x1], 0  ;;  %s1080_s12 = smov 0   ;;  %s1082_s13 = smov 0  }
   0x2   :  { %s1084_s14 = smov 0   ;;  %s1086_s15 = smov 0  }
   0x3 LB: > { %s1101_s16 = sadd.s32 4294967295, %s1051_s15   ;;  %s733_s17 = sadd.s32 4294967294, %s1051_s15   ;;  %s1051_s15 = sphi %s1086_s15, %s1288_s15   ;;  %s1047_s14 = sphi %s1084_s14, %s1287_s14   ;;  %s1043_s13 = sphi %s1082_s13, %s1286_s13   ;;  %s1039_s12 = sphi %s1080_s12, %s1285_s12  }
   0x4   : > { %s1105_s18 = sadd.s32 1, %s1051_s15   ;;  %s91_s19 = sadd.s32 1, %s1047_s14 }
   0x5   : > { %s88_s20 = ssub.s32 %s1051_s15, %s1105_s18  ;;  %p101_p0 = scmp.ne.s32.totalorder %s1047_s14, %s1043_s13 }
   0x6   : > { %p89_p1 = scmp.eq.s32.totalorder %s88_s20, 0  ;;  %p102_p2 = scmp.eq.s32.totalorder %s1101_s16, 1 }
   0x7   : > { %p107_p3 = scmp.ne.s32.totalorder %s1043_s13, %s1039_s12  ;;  %p108_p4 = scmp.eq.s32.totalorder %s733_s17, 1 }
   0x8   : > { %s1116_s21 = scalar_select %p89_p1, %s1047_s14, %s91_s19  }
   0x9   : > { %p1118_p5 = por %p102_p2, %p101_p0  ;;  %p1122_p6 = por %p108_p4, %p107_p3 }
   0xa   : > { %p736_p7 = scmp.ge.s32.totalorder %s1051_s15, 1  ;;  %p139_p8 = scmp.lt.s32.totalorder %s1051_s15, 3 }
   0xc   : > { %p140_p9 = pnand %p736_p7, %p139_p8 }
   0xd   : > { %p162_p10 = scmp.lt.s32.totalorder (!%p140_p9), %s1101_s16, 1  ;;  %s159_s27 = sand.u32 (!%p140_p9), 1, %s1043_s13  }
   0xe   : > { %143 = sbr.rel (%p140_p9) target bundleno = 682 (0x2aa), region = 32  ;;  %s737_s28 = sshll.u32 (!%p140_p9), %s159_s27, 3 }
   0xf   : > { %s749_s29 = sshll.u32 (!%p140_p9), %s1101_s16, 7  ;;  %s161_s30 = scalar_lea.vmem (!%p140_p9), [#allocation2], %s737_s28 }
  0x10   : > { %s674_s4 = sshll.u32 (!%p140_p9), %s161_s30, 4  ;;  %s1238_s7 = scalar_lea.hbm (!%p140_p9), %s1282_s3, %s749_s29  ;;  %s1240_s4 = int_to_ptr.vmem [resolvable:$true] %s674_s4 }
  0x11   : > { %s661_s8 = scalar_lea.sflag (!%p140_p9), [#allocation3], %s159_s27 }
  0x13   : > { %v1131_v0 = vld [vmem:[%s1281_s2 + $0x38] sm:$0xff]  ;;  %v1053_v2 = vmov 0   ;;  %v769_v5 = vld [vmem:[%s1280_s1 + $0x10] sm:$0xff]   ;;  %v1054_v10 = vmov 1   ;;  %v1055_v12 = vmov 2   ;;  %v174_v13 = vld [vmem:[%s1281_s2 + $0x28] sm:$0xff]  ;;  %v273_v29 = vlaneseq }
  0x14   : > { %v770_v1 = vld [vmem:[%s1280_s1 + $0x18] sm:$0xff]   ;;  %863 = vset.pattern.permute.xlu1 %v1053_v2  ;;  %857 = vset.pattern.permute.xlu0 %v1053_v2  ;;  %v175_v7 = vld [vmem:[%s1281_s2 + $0x30] sm:$0xff]  ;;  %v762_v8 = vunpack.c.l.bf16 %v769_v5  ;;  %v763_v9 = vunpack.c.h.bf16 %v769_v5  ;;  %v173_v14 = vld [vmem:[%s1281_s2 + $0x20] sm:$0xff]  ;;  %v1056_v18 = vmov 3   ;;  %vm521_vm0 = vcmask 523264   ;;  %s163_s5 = scalar_select %p162_p10, %s1101_s16, 1 }
  0x15   : > { %v766_v3 = vunpack.c.l.bf16 %v770_v1  ;;  %v767_v4 = vunpack.c.h.bf16 %v770_v1  ;;  %214 = vperm.xlu1 %863, %v1131_v0   ;;  %v768_v15 = vld [vmem:[%s1280_s1 + $0x8] sm:$0xff]   ;;  %v171_v20 = vld [vmem:[%s1281_s2 + $0x10] sm:$0xff]  ;;  %v753_v21 = vld [vmem:[%s1280_s1] sm:$0xff]   ;;  %v274_v31 = vshrl.u32 %v273_v29, 7  ;;  %vm1058_vm1 = vmmov 0   ;;  %s1059_s16 = smov [#allocation2]  }
  0x16   : > { %v870_v11 = vpack.i.bf16 %v763_v9, %v762_v8  ;;  %v758_v16 = vunpack.c.l.bf16 %v768_v15  ;;  %v759_v17 = vunpack.c.h.bf16 %v768_v15  ;;  %v172_v22 = vld [vmem:[%s1281_s2 + $0x18] sm:$0xff]  ;;  %v754_v23 = vunpack.c.l.bf16 %v753_v21  ;;  %v169_v26 = vld [vmem:[%s1281_s2] sm:$0xff]  ;;  %v170_v27 = vld [vmem:[%s1281_s2 + $0x8] sm:$0xff]  ;;  %s738_s6 = sshll.u32 %s163_s5, 1  ;;  %s995_s10 = sshll.u32 %s1059_s16, 4  ;;  %s996_s10 = int_to_ptr.vmem [resolvable:$false] %s995_s10 }
  0x17   : > { %v858_v6 = vpack.i.bf16 %v767_v4, %v766_v3  ;;  %v755_v24 = vunpack.c.h.bf16 %v753_v21  ;;  %v955_v28 = vld [vmem:[%s1280_s1 + $0x20] sm:$0xff]   ;;  %s165_s9 = scalar_lea.vmem %s1279_s0, %s738_s6  ;;  %v275_v34 = vsub.s32 0, %v274_v31  ;;  %v327_v38 = vsub.s32 1, %v274_v31  ;;  %s997_s11 = scalar_lea.vmem %s996_s10, 256 }
  0x18   : > { %v912_v19 = vpack.i.bf16 %v759_v17, %v758_v16  ;;  %792 = vmatprep.mubr.msk.bf16.mxu0 %vm521_vm0, %v955_v28  ;;  %v167_v32 = vld [vmem:[%s165_s9] sm:$0x3]  ;;  %v379_v43 = vsub.s32 2, %v274_v31  ;;  %v431_v55 = vsub.s32 3, %v274_v31  ;;  %s991_s9 = scalar_lea.vmem %s1240_s4, 128  ;;  %p998_p0 = scmp.lt.s32.totalorder %s1240_s4, %s996_s10 }
  0x19   : > { %859 = vperm.xlu0 %857, %v858_v6   ;;  %864 = vset.pattern.permute.xlu1 %v1054_v10  ;;  %v928_v25 = vpack.i.bf16 %v755_v24, %v754_v23  ;;  %v168_v35 = vunpack.c.l.bf16 %v167_v32  ;;  %p992_p11 = scmp.ne.s32.totalorder %s1240_s4, %s991_s9  ;;  %p999_p1 = scmp.lt.s32.totalorder %s997_s11, %s991_s9 }
  0x1a   : > { %866 = vperm.xlu1 %864, %v858_v6  }
  0x1b   : > { %v1177_v41 = vrot.slane %v168_v35, %v275_v34  ;;  %v1179_v45 = vrot.slane %v168_v35, %v327_v38  ;;  %v1183_v52 = vrot.slane %v168_v35, %v379_v43  ;;  %v1189_v62 = vrot.slane %v168_v35, %v431_v55  ;;  %p993_p12 = pnand %p992_p11, %p1118_p5  ;;  %p1000_p2 = por %p999_p1, %p998_p0 }
  0x1d   : > { %209 = vperm.xlu0 %857, %v175_v7   ;;  %p994_p13 = pneg %p993_p12 }
  0x1e   : > { %875 = vset.pattern.permute.xlu1 %v1055_v12 }
  0x1f   : > { %877 = vperm.xlu1 %875, %v858_v6   ;;  %p1001_p3 = pnand %p1000_p2, %p994_p13 }
  0x21   : > { %871 = vperm.xlu0 %857, %v870_v11  }
  0x23   : > { %881 = vset.pattern.permute.xlu1 %v1053_v2 }
  0x24   : > { %204 = vperm.xlu1 %881, %v174_v13  }
  0x25   : > { %199 = vperm.xlu0 %857, %v173_v14  }
  0x28   : > { %882 = vset.pattern.permute.xlu1 %v1056_v18 }
  0x29   : > { %894 = vset.pattern.permute.xlu0 %v1055_v12  ;;  %884 = vperm.xlu1 %882, %v858_v6  }
  0x2a   : > { %896 = vperm.xlu0 %894, %v870_v11  }
  0x2d   : > { %888 = vset.pattern.permute.xlu1 %v1053_v2 }
  0x2e   : > { %913 = vperm.xlu0 %894, %v912_v19   ;;  %890 = vperm.xlu1 %888, %v912_v19  }
  0x32   : > { %917 = vset.pattern.permute.xlu0 %v1054_v10  ;;  %189 = vperm.xlu1 %888, %v171_v20  }
  0x33   : > { %919 = vperm.xlu0 %917, %v870_v11  }
  0x36   : > { %194 = vperm.xlu1 %888, %v172_v22  }
  0x37   : > { %924 = vperm.xlu0 %917, %v912_v19  }
  0x3a   : > { %900 = vset.pattern.permute.xlu1 %v1056_v18 }
  0x3b   : > { %929 = vperm.xlu0 %917, %v928_v25   ;;  %902 = vperm.xlu1 %900, %v870_v11  }
  0x3f   : > { %945 = vset.pattern.permute.xlu0 %v1056_v18  ;;  %906 = vset.pattern.permute.xlu1 %v1053_v2 }
  0x40   : > { %947 = vperm.xlu0 %945, %v928_v25   ;;  %908 = vperm.xlu1 %906, %v928_v25  }
  0x44   : > { %952 = vset.pattern.permute.xlu0 %v1054_v10  ;;  %179 = vperm.xlu1 %906, %v169_v26  }
  0x45   : > { %486 = vperm.xlu0 %952, %v173_v14  }
  0x48   : > { %184 = vperm.xlu1 %906, %v170_v27  }
  0x49   : > { %482 = vperm.xlu0 %952, %v172_v22  }
  0x4c   : > { %933 = vset.pattern.permute.xlu1 %v1056_v18 }
  0x4d   : > { %474 = vperm.xlu0 %952, %v170_v27   ;;  %935 = vperm.xlu1 %933, %v912_v19  }
  0x51   : > { %954 = vset.pattern.permute.xlu0 %v1055_v12  ;;  %939 = vset.pattern.permute.xlu1 %v1055_v12 }
  0x52   : > { %941 = vperm.xlu1 %939, %v928_v25  }
  0x56   : > { %951 = vset.pattern.permute.xlu1 %v1054_v10 }
  0x57   : > { %494 = vperm.xlu1 %951, %v175_v7  }
  0x5b   : > { %498 = vperm.xlu1 %951, %v1131_v0  }
  0x5f   : > { %490 = vperm.xlu1 %951, %v174_v13  }
  0x63   : > { %478 = vperm.xlu1 %951, %v171_v20  }
  0x67   : > { %470 = vperm.xlu1 %951, %v169_v26  }
  0x6b   : > { %953 = vset.pattern.permute.xlu1 %v1055_v12 }
  0x6c   : > { %613 = vperm.xlu1 %953, %v169_v26  }
  0x90   : > { %v215_v30 = vpop.permute.xlu1 %214 }
  0x94   : > { %v860_v33 = vpop.permute.xlu0 %859 }
  0x95   : > { %v867_v36 = vpop.permute.xlu1 %866  ;;  %v862_v39 = vunpack.i.h.bf16 %v860_v33  ;;  %v861_v40 = vunpack.i.l.bf16 %v860_v33 }
  0x96   : > { %v869_v47 = vunpack.i.h.bf16 %v867_v36  ;;  %v868_v48 = vunpack.i.l.bf16 %v867_v36 }
  0x97   : > { %v284_v46 = vmul.f32 %v862_v39, %v1177_v41  ;;  %v283_v49 = vmul.f32 %v861_v40, %v1177_v41 }
  0x98   : > { %v210_v37 = vpop.permute.xlu0 %209  ;;  %v335_v57 = vmul.f32 %v868_v48, %v1179_v45  ;;  %v336_v58 = vmul.f32 %v869_v47, %v1179_v45 }
  0x99   : > { %v292_v56 = vadd.f32 %v284_v46, %v215_v30  ;;  %v291_v59 = vadd.f32 %v283_v49, %v210_v37 }
  0x9a   : > { %v878_v42 = vpop.permute.xlu1 %877 }
  0x9b   : > { %v880_v50 = vunpack.i.h.bf16 %v878_v42  ;;  %v879_v51 = vunpack.i.l.bf16 %v878_v42  ;;  %v344_v1 = vadd.f32 %v336_v58, %v292_v56  ;;  %v343_v2 = vadd.f32 %v335_v57, %v291_v59 }
  0x9c   : > { %v872_v44 = vpop.permute.xlu0 %871 }
  0x9d   : > { %v387_v60 = vmul.f32 %v879_v51, %v1183_v52  ;;  %v388_v61 = vmul.f32 %v880_v50, %v1183_v52  ;;  %v874_v13 = vunpack.i.h.bf16 %v872_v44  ;;  %v873_v14 = vunpack.i.l.bf16 %v872_v44 }
  0x9f   : > { %v205_v53 = vpop.permute.xlu1 %204  ;;  %v395_v5 = vadd.f32 %v387_v60, %v343_v2  ;;  %v396_v6 = vadd.f32 %v388_v61, %v344_v1  ;;  %v282_v19 = vmul.f32 %v874_v13, %v1177_v41  ;;  %v281_v20 = vmul.f32 %v873_v14, %v1177_v41 }
  0xa0   : > { %v200_v54 = vpop.permute.xlu0 %199 }
  0xa1   : > { %v290_v26 = vadd.f32 %v282_v19, %v205_v53  ;;  %v289_v27 = vadd.f32 %v281_v20, %v200_v54 }
  0xa4   : > { %v885_v63 = vpop.permute.xlu1 %884 }
  0xa5   : > { %v897_v0 = vpop.permute.xlu0 %896  ;;  %v887_v3 = vunpack.i.h.bf16 %v885_v63  ;;  %v886_v4 = vunpack.i.l.bf16 %v885_v63 }
  0xa6   : > { %v899_v21 = vunpack.i.h.bf16 %v897_v0  ;;  %v898_v22 = vunpack.i.l.bf16 %v897_v0 }
  0xa7   : > { %v439_v7 = vmul.f32 %v886_v4, %v1189_v62  ;;  %v440_v8 = vmul.f32 %v887_v3, %v1189_v62 }
  0xa8   : > { %v385_v28 = vmul.f32 %v898_v22, %v1183_v52  ;;  %v386_v29 = vmul.f32 %v899_v21, %v1183_v52 }
  0xa9   : > { %v914_v9 = vpop.permute.xlu0 %913  ;;  %v447_v10 = vadd.f32 %v439_v7, %v395_v5  ;;  %v448_v11 = vadd.f32 %v440_v8, %v396_v6  ;;  %v891_v12 = vpop.permute.xlu1 %890 }
  0xaa   : > { %v892_v48 = vunpack.i.l.bf16 %v891_v12  ;;  %v893_v49 = vunpack.i.h.bf16 %v891_v12  ;;  %v916_v55 = vunpack.i.h.bf16 %v914_v9  ;;  %v915_v58 = vunpack.i.l.bf16 %v914_v9 }
  0xab   : > { %959 = vtanh.f32 %v447_v10 }
  0xac   : > { %961 = vtanh.f32 %v448_v11  ;;  %v279_v54 = vmul.f32 %v892_v48, %v1177_v41  ;;  %v280_v57 = vmul.f32 %v893_v49, %v1177_v41  ;;  %v384_v2 = vmul.f32 %v916_v55, %v1183_v52  ;;  %v956_v48 = vld [vmem:[%s1280_s1 + $0x28] sm:$0xff]   ;;  %v958_v49 = vld [vmem:[%s1280_s1 + $0x38] sm:$0xff]  }
  0xad   : > { %v190_v16 = vpop.permute.xlu1 %189  ;;  %v383_v4 = vmul.f32 %v915_v58, %v1183_v52 }
  0xae   : > { %v920_v15 = vpop.permute.xlu0 %919  ;;  %v287_v1 = vadd.f32 %v279_v54, %v190_v16 }
  0xaf   : > { %v922_v17 = vunpack.i.h.bf16 %v920_v15  ;;  %v921_v18 = vunpack.i.l.bf16 %v920_v15 }
  0xb1   : > { %v333_v23 = vmul.f32 %v921_v18, %v1179_v45  ;;  %v334_v24 = vmul.f32 %v922_v17, %v1179_v45  ;;  %v195_v25 = vpop.permute.xlu1 %194 }
  0xb2   : > { %v925_v42 = vpop.permute.xlu0 %924  ;;  %v288_v60 = vadd.f32 %v280_v57, %v195_v25 }
  0xb3   : > { %v341_v30 = vadd.f32 %v333_v23, %v289_v27  ;;  %v342_v31 = vadd.f32 %v334_v24, %v290_v26  ;;  %v927_v50 = vunpack.i.h.bf16 %v925_v42  ;;  %v926_v51 = vunpack.i.l.bf16 %v925_v42 }
  0xb5   : > { %v393_v37 = vadd.f32 %v385_v28, %v341_v30  ;;  %v394_v38 = vadd.f32 %v386_v29, %v342_v31  ;;  %v332_v56 = vmul.f32 %v927_v50, %v1179_v45  ;;  %v331_v59 = vmul.f32 %v926_v51, %v1179_v45 }
  0xb6   : > { %v903_v32 = vpop.permute.xlu1 %902  ;;  %v930_v63 = vpop.permute.xlu0 %929  ;;  %v1057_v50 = vmov 0.0  }
  0xb7   : > { %v905_v33 = vunpack.i.h.bf16 %v903_v32  ;;  %v904_v34 = vunpack.i.l.bf16 %v903_v32  ;;  %v340_v3 = vadd.f32 %v332_v56, %v288_v60  ;;  %v339_v5 = vadd.f32 %v331_v59, %v287_v1  ;;  %800 = vmatprep.subr.bf16.mxu1 %v1057_v50  ;;  %808 = vmatprep.mubr.msk.bf16.mxu1 %vm1058_vm1, %v1057_v50 }
  0xb8   : > { %v960_v35 = vpop.eup %959  ;;  %v931_v7 = vunpack.i.l.bf16 %v930_v63  ;;  %v932_v11 = vunpack.i.h.bf16 %v930_v63 }
  0xb9   : > { %v962_v36 = vpop.eup %961  ;;  %v437_v39 = vmul.f32 %v904_v34, %v1189_v62  ;;  %v438_v40 = vmul.f32 %v905_v33, %v1189_v62  ;;  %v392_v12 = vadd.f32 %v384_v2, %v340_v3  ;;  %v391_v18 = vadd.f32 %v383_v4, %v339_v5 }
  0xba   : > { %v468_v43 = vpack.c.bf16 %v962_v36, %v960_v35  ;;  %v329_v17 = vmul.f32 %v931_v7, %v1179_v45  ;;  %v330_v25 = vmul.f32 %v932_v11, %v1179_v45 }
  0xbb   : > { %v445_v44 = vadd.f32 %v437_v39, %v393_v37  ;;  %v446_v46 = vadd.f32 %v438_v40, %v394_v38  ;;  %v909_v47 = vpop.permute.xlu1 %908  ;;  %v948_v10 = vpop.permute.xlu0 %947 }
  0xbc   : > { %784 = vmatprep.subr.bf16.mxu0 %v468_v43  ;;  %v910_v61 = vunpack.i.l.bf16 %v909_v47  ;;  %v911_v6 = vunpack.i.h.bf16 %v909_v47  ;;  %v950_v19 = vunpack.i.h.bf16 %v948_v10  ;;  %v949_v24 = vunpack.i.l.bf16 %v948_v10 }
  0xbd   : > { %963 = vtanh.f32 %v445_v44  ;;  %785 = vmatpush3.bf16.msra.mxu0 %v468_v43 }
  0xbe   : > { %965 = vtanh.f32 %v446_v46  ;;  %v277_v8 = vmul.f32 %v910_v61, %v1177_v41  ;;  %v278_v16 = vmul.f32 %v911_v6, %v1177_v41  ;;  %v433_v33 = vmul.f32 %v949_v24, %v1189_v62 }
  0xbf   : > { %v180_v53 = vpop.permute.xlu1 %179  ;;  %v434_v34 = vmul.f32 %v950_v19, %v1189_v62 }
  0xc0   : > { %v285_v21 = vadd.f32 %v277_v8, %v180_v53  ;;  %v487_v57 = vpop.permute.xlu0 %486 }
  0xc2   : > { %v337_v41 = vadd.f32 %v329_v17, %v285_v21 }
  0xc3   : > { %v185_v0 = vpop.permute.xlu1 %184 }
  0xc4   : > { %v286_v26 = vadd.f32 %v278_v16, %v185_v0  ;;  %v483_v0 = vpop.permute.xlu0 %482 }
  0xc6   : > { %v338_v35 = vadd.f32 %v330_v25, %v286_v26  ;;  %v607_v25 = vld [vmem:[%s1280_s1 + $0x40] sm:$0xf] }
  0xc8   : > { %v936_v9 = vpop.permute.xlu1 %935  ;;  %v475_v8 = vpop.permute.xlu0 %474 }
  0xc9   : > { %v938_v13 = vunpack.i.h.bf16 %v936_v9  ;;  %v937_v14 = vunpack.i.l.bf16 %v936_v9 }
  0xca   : > { %v964_v15 = vpop.eup %963 }
  0xcb   : > { %v966_v20 = vpop.eup %965  ;;  %v435_v22 = vmul.f32 %v937_v14, %v1189_v62  ;;  %v436_v23 = vmul.f32 %v938_v13, %v1189_v62 }
  0xcc   : > { %v467_v27 = vpack.c.bf16 %v966_v20, %v964_v15 }
  0xcd   : > { %v443_v28 = vadd.f32 %v435_v22, %v391_v18  ;;  %v444_v29 = vadd.f32 %v436_v23, %v392_v12  ;;  %v942_v30 = vpop.permute.xlu1 %941 }
  0xce   : > { %v944_v31 = vunpack.i.h.bf16 %v942_v30  ;;  %v943_v32 = vunpack.i.l.bf16 %v942_v30  ;;  %786 = vmatprep.subr.bf16.mxu0 %v467_v27 }
  0xcf   : > { %967 = vtanh.f32 %v443_v28  ;;  %787 = vmatpush3.bf16.msra.mxu0 %v467_v27 }
  0xd0   : > { %969 = vtanh.f32 %v444_v29  ;;  %v381_v36 = vmul.f32 %v943_v32, %v1183_v52  ;;  %v382_v45 = vmul.f32 %v944_v31, %v1183_v52  ;;  %v957_v52 = vld [vmem:[%s1280_s1 + $0x30] sm:$0xff]  }
  0xd2   : > { %v389_v37 = vadd.f32 %v381_v36, %v337_v41  ;;  %v390_v38 = vadd.f32 %v382_v45, %v338_v35  ;;  %v495_v51 = vpop.permute.xlu1 %494 }
  0xd4   : > { %v441_v39 = vadd.f32 %v433_v33, %v389_v37  ;;  %v442_v40 = vadd.f32 %v434_v34, %v390_v38 }
  0xd6   : > { %971 = vtanh.f32 %v441_v39  ;;  %v499_v54 = vpop.permute.xlu1 %498 }
  0xd7   : > { %973 = vtanh.f32 %v442_v40 }
  0xda   : > { %v491_v59 = vpop.permute.xlu1 %490 }
  0xdc   : > { %v968_v42 = vpop.eup %967 }
  0xdd   : > { %v970_v43 = vpop.eup %969 }
  0xde   : > { %v466_v44 = vpack.c.bf16 %v970_v43, %v968_v42  ;;  %v479_v3 = vpop.permute.xlu1 %478 }
  0xe0   : > { %788 = vmatprep.subr.bf16.mxu0 %v466_v44 }
  0xe1   : > { %789 = vmatpush3.bf16.msra.mxu0 %v466_v44 }
  0xe2   : > { %v471_v11 = vpop.permute.xlu1 %470 }
  0xe3   : > { %v972_v46 = vpop.eup %971 }
  0xe4   : > { %v974_v47 = vpop.eup %973 }
  0xe5   : > { %v465_v62 = vpack.c.bf16 %v974_v47, %v972_v46 }
  0xe7   : > { %790 = vmatprep.subr.bf16.mxu0 %v465_v62  ;;  %v614_v26 = vpop.permute.xlu1 %613 }
  0xe8   : > { %791 = vmatpush3.bf16.msra.mxu0 %v465_v62 }
  0xeb   : > { %793 = vmatmul.mubr.msk.bf16.vlgmr.msra.gmra.mxu0 %vm521_vm0, %v956_v48 }
  0xec   : > { %796 = vmatprep.mubr.msk.bf16.mxu0 %vm521_vm0, %v957_v52 }
  0xf3   : > { %797 = vmatmul.mubr.msk.bf16.gmra.mxu0 %vm521_vm0, %v958_v49 }
 0x1ab   : > { %v794_v53 = vpop.f32.mrf.mxu0 }
 0x1ac   : > { %v577_v10 = vadd.f32 %v794_v53, %v479_v3 }
 0x1ad   : > { %v568_v55 = vpop.f32.mrf.mxu0 }
 0x1ae   : > { %v569_v12 = vadd.f32 %v568_v55, %v471_v11 }
 0x1af   : > { %v795_v56 = vpop.f32.mrf.mxu0 }
 0x1b0   : > { %v580_v7 = vadd.f32 %v795_v56, %v483_v0 }
 0x1b1   : > { %v571_v58 = vpop.f32.mrf.mxu0 }
 0x1b2   : > { %v572_v9 = vadd.f32 %v571_v58, %v475_v8 }
 0x1b3   : > { %v798_v60 = vpop.f32.mrf.mxu0 }
 0x1b4   : > { %v593_v61 = vadd.f32 %v798_v60, %v495_v51 }
 0x1b5   : > { %v584_v63 = vpop.f32.mrf.mxu0 }
 0x1b6   : > { %975 = vtanh.f32 %v593_v61  ;;  %v585_v5 = vadd.f32 %v584_v63, %v487_v57 }
 0x1b7   : > { %v799_v1 = vpop.f32.mrf.mxu0 }
 0x1b8   : > { %v596_v2 = vadd.f32 %v799_v1, %v499_v54 }
 0x1b9   : > { %v587_v4 = vpop.f32.mrf.mxu0 }
 0x1ba   : > { %977 = vtanh.f32 %v596_v2  ;;  %v588_v6 = vadd.f32 %v587_v4, %v491_v59 }
 0x1bc   : > { %979 = vtanh.f32 %v588_v6 }
 0x1bd   : > { %981 = vtanh.f32 %v585_v5 }
 0x1be   : > { %983 = vtanh.f32 %v580_v7 }
 0x1bf   : > { %985 = vtanh.f32 %v577_v10 }
 0x1c0   : > { %987 = vtanh.f32 %v572_v9 }
 0x1c1   : > { %989 = vtanh.f32 %v569_v12 }
 0x1c3   : > { %v976_v13 = vpop.eup %975 }
 0x1c7   : > { %v978_v14 = vpop.eup %977 }
 0x1c8   : > { %v611_v15 = vpack.c.bf16 %v978_v14, %v976_v13 }
 0x1c9   : > { %v980_v17 = vpop.eup %979 }
 0x1ca   : > { %801 = vmatpush3.bf16.msra.mxu1 %v611_v15  ;;  %v982_v16 = vpop.eup %981 }
 0x1cb   : > { %802 = vmatprep.subr.bf16.mxu1 %v1057_v50  ;;  %v610_v18 = vpack.c.bf16 %v980_v17, %v982_v16  ;;  %v984_v19 = vpop.eup %983 }
 0x1cc   : > { %v986_v20 = vpop.eup %985 }
 0x1cd   : > { %v609_v21 = vpack.c.bf16 %v984_v19, %v986_v20  ;;  %v988_v22 = vpop.eup %987 }
 0x1ce   : > { %803 = vmatpush3.bf16.msra.mxu1 %v610_v18  ;;  %v990_v23 = vpop.eup %989 }
 0x1cf   : > { %804 = vmatprep.subr.bf16.mxu1 %v1057_v50  ;;  %v608_v24 = vpack.c.bf16 %v988_v22, %v990_v23 }
 0x1d2   : > { %805 = vmatpush3.bf16.msra.mxu1 %v609_v21 }
 0x1d3   : > { %806 = vmatprep.subr.bf16.mxu1 %v1057_v50 }
 0x1d6   : > { %807 = vmatpush3.bf16.msra.mxu1 %v608_v24 }
 0x1d9   : > { %809 = vmatmul.mubr.msk.bf16.vlgmr.msra.gmra.mxu1 %vm521_vm0, %v607_v25 }
 0x299   : > { %v653_v27 = vpop.f32.mrf.mxu1 }
 0x29a   : > { %v654_v28 = vadd.f32 %v653_v27, %v614_v26 }
 0x29b   : > { %v810_v29 = vpop.f32.mrf.mxu1 }
 0x29c   : > { %659 = vst [vmem:[%s161_s30] sm:$0xff] %v654_v28 }
 0x29d   : > { %v656_v30 = vpop.f32.mrf.mxu1 }
 0x29e   : > { %1004 = shalt.err (!%p1001_p3)
}
 0x29f   : > { %s1005_s17 = scalar_lea.hbm %s1238_s7, 128  ;;  %s1009_s24 = scalar_lea.hbm %s1282_s3, 256 }
 0x2a0   : > { %p1006_p4 = scmp.ne.s32.totalorder %s1238_s7, %s1005_s17  ;;  %p1010_p9 = scmp.lt.s32.totalorder %s1238_s7, %s1282_s3 }
 0x2a1   : > { %p1011_p10 = scmp.lt.s32.totalorder %s1009_s24, %s1005_s17 }
 0x2a2   : > { %p1007_p7 = pnand %p1006_p4, %p1118_p5 }
 0x2a3   : > { %p1012_p11 = por %p1011_p10, %p1010_p9 }
 0x2a4   : > { %p1008_p8 = pneg %p1007_p7 }
 0x2a6   : > { %p1013_p12 = pnand %p1012_p11, %p1008_p8 }
 0x2a8   : > { %1016 = shalt.err (!%p1013_p12)
}
 0x2a9   : > { %812 = dma.vmem_to_hbm [thread:$0]  (%p1118_p5), %s1240_s4, 128, %s1238_s7, %s661_s8   ;;  %v811_v31 = vpop.f32.mrf.mxu1 }
 0x2aa PF: > { %p818_p13 = scmp.ge.s32.totalorder %s1051_s15, 2  ;;  %s686_s27 = sand.u32 1, %s1039_s12  }
 0x2ab   : > { %s687_s28 = scalar_lea.sflag [#allocation3], %s686_s27 }
 0x2ac   : > { %p815_p0 = pnand %p818_p13, %p1122_p6 }
 0x2ae   : > { %p816_p1 = pneg %p815_p0 }
 0x2b0   : > { %1034 = dma.done.wait (%p816_p1), %s687_s28, 128  }
 0x2b1   : > { %1036 = vsyncadd (%p816_p1), %s687_s28, 4294967168  ;;  %p13_p2 = scmp.ge.s32.totalorder %s1105_s18, 4   ;;  %s1285_s12 = smov %s1043_s13 }
 0x2b2   : > { %s1286_s13 = smov %s1047_s14  ;;  %s1287_s14 = smov %s1116_s21 }
 0x2b3   : > { %s1288_s15 = smov %s1105_s18  ;;  %15 = sbr.rel (!%p13_p2) target bundleno = 3 (0x3), region = 67 }
 0x2b8   :  { %692 = vsyncpa [#allocation3], 1 }
 0x2b9   :  { %694 = vsyncpa [#allocation3 + $0x1], 1 }

</bundles_post_ra>
